<compile_context>
chip_gen: v7x
topology: tpu7x:2x2x1
jax: 0.10.0
libtpu: 0.0.40
codegen_flags: <defaults>
</compile_context>

<pallas_src>
import jax
import jax.numpy as jnp
import numpy as np
from jax.experimental import pallas as pl
from jax.experimental.pallas import tpu as pltpu


# ----------------------------------------------------------------------------
# Pallas kernels: fused 1x1 projection conv + BatchNorm (f32 epilogue) [+ residual]
# ----------------------------------------------------------------------------
def _proj_bn_kernel(x_ref, w_ref, s_ref, b_ref, o_ref):
    # x_ref : (1, C_in, T_HW)   activation tile, native dtype
    # w_ref : (C_out, C_in)     un-scaled 1x1 projection weight, native dtype
    # s_ref : (C_out, 1)        BN scale = gamma / sqrt(var + eps)        (f32)
    # b_ref : (C_out, 1)        BN shift = beta - mean * scale            (f32)
    # o_ref : (1, C_out, T_HW)
    acc = jnp.dot(w_ref[...], x_ref[0], preferred_element_type=jnp.float32)
    o_ref[0] = (acc * s_ref[...] + b_ref[...]).astype(o_ref.dtype)


def _proj_bn_res_kernel(x_ref, w_ref, s_ref, b_ref, r_ref, o_ref):
    # Same as above plus a residual tile r_ref : (1, C_out, T_HW), added in f32.
    acc = jnp.dot(w_ref[...], x_ref[0], preferred_element_type=jnp.float32)
    acc = acc * s_ref[...] + b_ref[...] + r_ref[0].astype(jnp.float32)
    o_ref[0] = acc.astype(o_ref.dtype)


# ----------------------------------------------------------------------------
# Tile-size selection: lane-dense (multiple of 128) spatial tile, sized against
# the full double-buffered per-step VMEM footprint.
# ----------------------------------------------------------------------------
def _ceil_div(a, b):
    return -(-a // b)


def _pick_hw_tile(hw, c_in, c_out, itemsize, n_batch, with_residual,
                  working_set_budget=12 << 20, max_lanes=8192):
    """Return (t_hw, footprint_bytes).

    t_hw is always a multiple of 128 (lane-dense); the tail block (if hw is not a
    multiple of t_hw) is handled by Pallas masking. Footprint accounts for the
    double-buffered x / out / residual tiles plus the double-buffered weight and
    the (tiny) f32 BN vectors.
    """
    hw_blocks = _ceil_div(hw, 128)
    # bytes per 128 spatial lanes, double-buffered:
    per_block = 2 * (c_in + (2 if with_residual else 1) * c_out) * 128 * itemsize
    # grid-invariant operands: weight (double-buffered) + scale/shift (f32, x2 bufs)
    fixed = 2 * c_out * c_in * itemsize + 4 * c_out * 4
    budget_blocks = max(1, (working_set_budget - fixed) // per_block)
    blocks = max(1, min(hw_blocks, budget_blocks, max_lanes // 128))
    # Guarantee >= 2 grid steps total (megacore on v7x, pipeline overlap everywhere).
    if hw_blocks > 1 and n_batch * _ceil_div(hw_blocks, blocks) < 2:
        blocks = _ceil_div(hw_blocks, 2)
    t_hw = blocks * 128
    footprint = fixed + blocks * per_block
    return t_hw, footprint


# ----------------------------------------------------------------------------
# Wrapper: layout-free glue in plain JAX, hot path in the Pallas kernel
# ----------------------------------------------------------------------------
def align_vision_final_block_layer(
    embeddings,        # (N, C_out, H, W) residual input (used only when apply_dropout)
    hidden_states,     # (N, C_in, H, W)
    proj_weight,       # (C_out, C_in, 1, 1)  -- PyTorch 1x1 conv weight, bias=False
    gamma, beta,       # (C_out,), (C_out,)   -- BN affine params
    running_mean, running_var,  # (C_out,), (C_out,)
    *,
    stride,
    id_skip,
    drop_rate=0.0,
    eps=1e-3,
):
    del drop_rate  # nn.Dropout in eval mode is the identity
    apply_dropout = (stride == 1) and (not id_skip)

    n, c_in, h, w = hidden_states.shape
    c_out = proj_weight.shape[0]
    hw = h * w
    dtype = hidden_states.dtype
    itemsize = jnp.dtype(dtype).itemsize

    # (N, C_in, H, W) -> (N, C_in, H*W): contiguous reshape, no HBM transpose pass.
    x = hidden_states.reshape(n, c_in, hw)

    # Weight stays un-scaled in the activation dtype; BN scale/shift are applied to the
    # f32 accumulator in the kernel epilogue (exact parity with the reference, free in a
    # memory-bound kernel even for bf16 traffic).
    w2d = proj_weight[:, :, 0, 0].astype(dtype)
    scale = (gamma.astype(jnp.float32)
             / jnp.sqrt(running_var.astype(jnp.float32) + eps)).reshape(c_out, 1)
    shift = (beta.astype(jnp.float32).reshape(c_out, 1)
             - running_mean.astype(jnp.float32).reshape(c_out, 1) * scale)

    t_hw, footprint = _pick_hw_tile(hw, c_in, c_out, itemsize, n, apply_dropout)
    grid = (n, pl.cdiv(hw, t_hw))
    vmem_limit = int(min(64 << 20, max(16 << 20, footprint + (4 << 20))))

    in_specs = [
        pl.BlockSpec((1, c_in, t_hw), lambda b, j: (b, 0, j)),
        pl.BlockSpec((c_out, c_in), lambda b, j: (0, 0)),
        pl.BlockSpec((c_out, 1), lambda b, j: (0, 0)),
        pl.BlockSpec((c_out, 1), lambda b, j: (0, 0)),
    ]
    args = [x, w2d, scale, shift]

    if apply_dropout:
        if embeddings.shape != (n, c_out, h, w):
            raise ValueError(
                f"embeddings shape {embeddings.shape} incompatible with residual add "
                f"{(n, c_out, h, w)}")
        res = embeddings.reshape(n, c_out, hw)
        in_specs.append(pl.BlockSpec((1, c_out, t_hw), lambda b, j: (b, 0, j)))
        args.append(res)
        kernel = _proj_bn_res_kernel
    else:
        kernel = _proj_bn_kernel

    out = pl.pallas_call(
        kernel,
        out_shape=jax.ShapeDtypeStruct((n, c_out, hw), dtype),
        grid_spec=pltpu.PrefetchScalarGridSpec(
            num_scalar_prefetch=0,
            grid=grid,
            in_specs=in_specs,
            out_specs=pl.BlockSpec((1, c_out, t_hw), lambda b, j: (b, 0, j)),
        ),
        compiler_params=pltpu.CompilerParams(
            dimension_semantics=("parallel", "parallel"),
            vmem_limit_bytes=vmem_limit),
    )(*args)

    return out.reshape(n, c_out, h, w)


# ----------------------------------------------------------------------------
# Pure-JAX reference for correctness checking (f32)
# ----------------------------------------------------------------------------
def _reference(embeddings, hidden_states, proj_weight, gamma, beta,
               running_mean, running_var, *, stride, id_skip, eps=1e-3):
    w2d = proj_weight[:, :, 0, 0]
    y = jnp.einsum("oc,nchw->nohw", w2d, hidden_states)
    scale = gamma / jnp.sqrt(running_var + eps)
    y = y * scale[None, :, None, None] + (beta - running_mean * scale)[None, :, None, None]
    if stride == 1 and not id_skip:
        y = y + embeddings
    return y


# ----------------------------------------------------------------------------
# Demo
# ----------------------------------------------------------------------------
if __name__ == "__main__":
    key = jax.random.PRNGKey(0)
    N = 2

    # (in_dim, out_dim, H, W, stride, id_skip, dtype, tol)
    configs = [
        (8, 8, 16, 16, 1, False, jnp.float32, 1e-3),    # residual path, hw = 256 (lane-exact)
        (8, 16, 14, 14, 1, True, jnp.float32, 1e-3),    # ragged hw = 196 -> masked tail tile
        (16, 16, 14, 14, 1, False, jnp.bfloat16, 3e-2), # bf16 traffic + residual, ragged hw
    ]

    ok = True
    for (c_in, c_out, h, w_sp, stride, id_skip, dtype, tol) in configs:
        key, k0, k1, k2, k3, k4, k5, k6 = jax.random.split(key, 8)
        hidden = jax.random.normal(k0, (N, c_in, h, w_sp), dtype=jnp.float32).astype(dtype)
        emb = jax.random.normal(k1, (N, c_out, h, w_sp), dtype=jnp.float32).astype(dtype)
        wconv = (0.1 * jax.random.normal(k2, (c_out, c_in, 1, 1),
                                         dtype=jnp.float32)).astype(dtype)
        gamma = 1.0 + 0.1 * jax.random.normal(k3, (c_out,), dtype=jnp.float32)
        beta = 0.1 * jax.random.normal(k4, (c_out,), dtype=jnp.float32)
        mean = 0.05 * jax.random.normal(k5, (c_out,), dtype=jnp.float32)
        var = jnp.abs(1.0 + 0.1 * jax.random.normal(k6, (c_out,), dtype=jnp.float32))

        out = align_vision_final_block_layer(
            emb, hidden, wconv, gamma, beta, mean, var,
            stride=stride, id_skip=id_skip, drop_rate=0.2)
        out = jax.block_until_ready(out)

        ref = _reference(emb.astype(jnp.float32), hidden.astype(jnp.float32),
                         wconv.astype(jnp.float32), gamma, beta, mean, var,
                         stride=stride, id_skip=id_skip)

        out_f32 = np.asarray(out, dtype=np.float32)
        ref_f32 = np.asarray(ref)
        if not np.allclose(out_f32, ref_f32, atol=tol, rtol=tol):
            ok = False
            err = float(np.max(np.abs(out_f32 - ref_f32)))
            print(f"MISMATCH in_dim={c_in} out_dim={c_out} hw={h}x{w_sp} "
                  f"stride={stride} id_skip={id_skip} dtype={dtype} max_err={err}")

    if ok:
        print("KERNEL_OK")
</pallas_src>

<mosaic_0001>
module attributes {stable_mosaic.version = 11 : i64} {
  func.func @_proj_bn_res_kernel(%arg0: i32, %arg1: i32, %arg2: memref<1x8x256xf32, #tpu.memory_space<vmem>>, %arg3: memref<8x8xf32, #tpu.memory_space<vmem>>, %arg4: memref<8x1xf32, #tpu.memory_space<vmem>>, %arg5: memref<8x1xf32, #tpu.memory_space<vmem>>, %arg6: memref<1x8x256xf32, #tpu.memory_space<vmem>>, %arg7: memref<1x8x256xf32, #tpu.memory_space<vmem>>) attributes {dimension_semantics = [#tpu.dimension_semantics<parallel>, #tpu.dimension_semantics<parallel>], iteration_bounds = array<i64: 2, 1>, scalar_prefetch = 0 : i64, scratch_operands = 0 : i64, tpu.core_type = #tpu.core_type<tc>, window_params = [{transform_indices = @transform_0, window_bounds = array<i64: 1, 8, 256>}, {pipeline_mode = #tpu.pipeline_mode<synchronous>, transform_indices = @transform_1, window_bounds = array<i64: 8, 8>}, {pipeline_mode = #tpu.pipeline_mode<synchronous>, transform_indices = @transform_2, window_bounds = array<i64: 8, 1>}, {pipeline_mode = #tpu.pipeline_mode<synchronous>, transform_indices = @transform_3, window_bounds = array<i64: 8, 1>}, {transform_indices = @transform_4, window_bounds = array<i64: 1, 8, 256>}, {transform_indices = @transform_5, window_bounds = array<i64: 1, 8, 256>}]} {
    %c0 = arith.constant 0 : index
    %c0_0 = arith.constant 0 : index
    %0 = vector.load %arg3[%c0, %c0_0] : memref<8x8xf32, #tpu.memory_space<vmem>>, vector<8x8xf32>
    %c0_1 = arith.constant 0 : index
    %c0_2 = arith.constant 0 : index
    %c0_3 = arith.constant 0 : index
    %1 = vector.load %arg2[%c0_1, %c0_2, %c0_3] : memref<1x8x256xf32, #tpu.memory_space<vmem>>, vector<1x8x256xf32>
    %2 = vector.shape_cast %1 : vector<1x8x256xf32> to vector<8x256xf32>
    %cst = arith.constant dense<0.000000e+00> : vector<8x256xf32>
    %3 = tpu.matmul %0, %2, %cst {dimension_numbers = #tpu.dot_dimension_numbers<[1], [0], [0], [1], [0, 0, 1, 1], [], []>} : vector<8x8xf32>, vector<8x256xf32>, vector<8x256xf32> -> vector<8x256xf32>
    %c0_4 = arith.constant 0 : index
    %c0_5 = arith.constant 0 : index
    %4 = vector.load %arg4[%c0_4, %c0_5] : memref<8x1xf32, #tpu.memory_space<vmem>>, vector<8x1xf32>
    %5 = vector.broadcast %4 : vector<8x1xf32> to vector<8x256xf32>
    %6 = arith.mulf %3, %5 : vector<8x256xf32>
    %c0_6 = arith.constant 0 : index
    %c0_7 = arith.constant 0 : index
    %7 = vector.load %arg5[%c0_6, %c0_7] : memref<8x1xf32, #tpu.memory_space<vmem>>, vector<8x1xf32>
    %8 = vector.broadcast %7 : vector<8x1xf32> to vector<8x256xf32>
    %9 = arith.addf %6, %8 : vector<8x256xf32>
    %c0_8 = arith.constant 0 : index
    %c0_9 = arith.constant 0 : index
    %c0_10 = arith.constant 0 : index
    %10 = vector.load %arg6[%c0_8, %c0_9, %c0_10] : memref<1x8x256xf32, #tpu.memory_space<vmem>>, vector<1x8x256xf32>
    %11 = vector.shape_cast %10 : vector<1x8x256xf32> to vector<8x256xf32>
    %12 = arith.addf %9, %11 : vector<8x256xf32>
    %c0_11 = arith.constant 0 : index
    %c0_12 = arith.constant 0 : index
    %c0_13 = arith.constant 0 : index
    %13 = vector.load %arg7[%c0_11, %c0_12, %c0_13] : memref<1x8x256xf32, #tpu.memory_space<vmem>>, vector<1x8x256xf32>
    %14 = vector.shape_cast %13 : vector<1x8x256xf32> to vector<8x256xf32>
    %15 = vector.shape_cast %12 : vector<8x256xf32> to vector<1x8x256xf32>
    tpu.vector_store %arg7[%c0_11, %c0_12, %c0_13], %15 {strides = array<i32>} : memref<1x8x256xf32, #tpu.memory_space<vmem>>, vector<1x8x256xf32>,
    return
  }
  func.func @transform_0(%arg0: i32, %arg1: i32) -> (i32, i32, i32) {
    %c0_i32 = arith.constant 0 : i32
    %c0_i32_0 = arith.constant 0 : i32
    return %arg0, %c0_i32, %arg1 : i32, i32, i32
  }
  func.func @transform_1(%arg0: i32, %arg1: i32) -> (i32, i32) {
    %c0_i32 = arith.constant 0 : i32
    %c0_i32_0 = arith.constant 0 : i32
    %c0_i32_1 = arith.constant 0 : i32
    return %c0_i32, %c0_i32_0 : i32, i32
  }
  func.func @transform_2(%arg0: i32, %arg1: i32) -> (i32, i32) {
    %c0_i32 = arith.constant 0 : i32
    %c0_i32_0 = arith.constant 0 : i32
    %c0_i32_1 = arith.constant 0 : i32
    return %c0_i32, %c0_i32_0 : i32, i32
  }
  func.func @transform_3(%arg0: i32, %arg1: i32) -> (i32, i32) {
    %c0_i32 = arith.constant 0 : i32
    %c0_i32_0 = arith.constant 0 : i32
    %c0_i32_1 = arith.constant 0 : i32
    return %c0_i32, %c0_i32_0 : i32, i32
  }
  func.func @transform_4(%arg0: i32, %arg1: i32) -> (i32, i32, i32) {
    %c0_i32 = arith.constant 0 : i32
    %c0_i32_0 = arith.constant 0 : i32
    return %arg0, %c0_i32, %arg1 : i32, i32, i32
  }
  func.func @transform_5(%arg0: i32, %arg1: i32) -> (i32, i32, i32) {
    %c0_i32 = arith.constant 0 : i32
    %c0_i32_0 = arith.constant 0 : i32
    return %arg0, %c0_i32, %arg1 : i32, i32, i32
  }
}

</mosaic_0001>

<bundles_post_ra>
// kernel: tpu_custom_call.1
= control target key start
LH: loop header
LB: loop body
LE: loop exit
PB: predicated region body
PF: predicated region fallthrough
CT: control target
= control target key end

     0   :  { %10 = vsyncpa [#allocation3], 0  ;;  %s1050_s0 = inlined_call_operand.hbm [shape: f32[2,8,256], index: 0, kind: input, shape index: {}]   ;;  %s1051_s1 = inlined_call_operand.hbm [shape: f32[8,8], index: 1, kind: input, shape index: {}]   ;;  %s1052_s2 = inlined_call_operand.vmem [shape: f32[8,1], index: 2, kind: input, shape index: {}]   ;;  %s1053_s3 = inlined_call_operand.vmem [shape: f32[8,1], index: 3, kind: input, shape index: {}]   ;;  %s1054_s4 = inlined_call_operand.vmem [shape: f32[2,8,256], index: 4, kind: input, shape index: {}]   ;;  %s1055_s5 = inlined_call_operand.hbm [shape: f32[2,8,256], index: 5, kind: output, shape index: {}]  }
   0x1   :  { %12 = vsyncpa [#allocation3 + $0x1], 0 }
   0x2   :  { %13 = vsyncpa [#allocation6], 0 }
   0x3   :  { %14 = vsyncpa [#allocation4], 0 }
   0x4   :  { %16 = vsyncpa [#allocation4 + $0x1], 0  ;;  %s819_s18 = smov 0   ;;  %s821_s19 = smov 0  }
   0x5   :  { %s823_s20 = smov 0   ;;  %s825_s21 = smov 0  }
   0x6   :  { %s827_s22 = smov 0   ;;  %s829_s23 = smov 0  }
   0x7 LB: > { %s539_s24 = sadd.s32 4294967295, %s782_s23   ;;  %s540_s25 = sadd.s32 4294967294, %s782_s23   ;;  %s782_s23 = sphi %s829_s23, %s22_s23   ;;  %s778_s22 = sphi %s827_s22, %s1080_s22   ;;  %s774_s21 = sphi %s825_s21, %s1079_s21   ;;  %s770_s20 = sphi %s823_s20, %s1078_s20   ;;  %s766_s19 = sphi %s821_s19, %s1077_s19   ;;  %s762_s18 = sphi %s819_s18, %s1076_s18  }
   0x8   : > { %p56_p0 = scmp.ne.s32.totalorder %s766_s19, %s762_s18  ;;  %p853_p1 = scmp.eq.s32.totalorder %s539_s24, 0 }
   0x9   : > { %p857_p2 = scmp.eq.s32.totalorder %s539_s24, 1  ;;  %p179_p3 = scmp.eq.s32.totalorder %s540_s25, 1 }
   0xa   : > { %s1060_s26 = scalar_select %p853_p1, 1, 0 }
   0xb   : > { %s1061_s27 = scalar_select %p857_p2, 1, 0 }
   0xc   : > { %p863_p4 = por %p853_p1, %p56_p0  ;;  %p541_p5 = scmp.ge.s32.totalorder %s782_s23, 1 }
   0xd   : > { %p868_p6 = por %p179_p3, %p56_p0  ;;  %p186_p7 = scmp.lt.s32.totalorder %s782_s23, 3 }
   0xe   : > { %s1062_s28 = scalar_select %p863_p4, 1, 0 }
   0xf   : > { %s1063_s29 = scalar_select %p868_p6, 1, 0 }
  0x10   : > { %p873_p8 = pnand %p541_p5, %p186_p7  ;;  %s784_s6 = smov [#allocation5]  }
  0x11   : > { %s199_s7 = sshll.u32 %s784_s6, 4  ;;  %s34_s9 = sadd.s32 1, %s778_s22  ;;  %s200_s7 = int_to_ptr.vmem [resolvable:$true] %s199_s7 }
  0x12   : > { %s1064_s30 = scalar_select %p873_p8, 1, 0 }
  0x13   : > { %p570_p10 = pneg %p873_p8  ;;  %s43_s10 = sadd.s32 1, %s770_s20 }
  0x14   : > { %p888_p12 = scmp.ge.s32.totalorder %s34_s9, 2  ;;  %s638_s14 = scalar_lea.hbm %s1051_s1, 128 }
  0x15   : > { %p882_p11 = pnand %p570_p10, %p853_p1  ;;  %p639_p13 = scmp.ne.s32.totalorder %s1051_s1, %s638_s14 }
  0x16   : > { %s1066_s11 = scalar_select %p888_p12, 1, 0 }
  0x17   : > { %p640_p0 = pneg %p882_p11  ;;  %p645_p7 = scmp.lt.u32.totalorder %s638_s14, %s1051_s1 }
  0x19   : > { %p641_p3 = pnand %p640_p0, %p639_p13 }
  0x1b   : > { %p642_p5 = pneg %p641_p3 }
  0x1d   : > { %p647_p10 = pnand %p645_p7, %p642_p5 }
  0x1f   : > { %650 = shalt.err (!%p647_p10)
}
  0x20   : > { %s651_s25 = scalar_lea.vmem %s200_s7, 128  ;;  %p659_p4 = scmp.lt.s32.totalorder %s200_s7, %s200_s7 }
  0x21   : > { %p652_p9 = scmp.ne.s32.totalorder %s200_s7, %s651_s25  ;;  %p660_p8 = scmp.lt.s32.totalorder %s651_s25, %s651_s25 }
  0x23   : > { %p654_p6 = pnand %p652_p9, %p640_p0  ;;  %p661_p2 = por %p660_p8, %p659_p4 }
  0x25   : > { %p655_p1 = pneg %p654_p6 }
  0x27   : > { %p662_p12 = pnand %p661_p2, %p655_p1 }
  0x29   : > { %665 = shalt.err (!%p662_p12)
}
  0x2a   : > { %573 = dma.hbm_to_vmem [thread:$0]  (!%p882_p11), %s1051_s1, 128, %s200_s7, [#allocation6]  }
  0x2b   : > { %p1067_p4 = scmp.ne.s32.totalorder %s1066_s11, 0  ;;  %p50_p1 = scmp.ne.s32.totalorder %s770_s20, %s766_s19 }
  0x2c   : > { %p51_p2 = scmp.eq.s32.totalorder %s782_s23, 0  ;;  %p583_p6 = scmp.lt.s32.totalorder %s782_s23, 2 }
  0x2d   : > { %s1082_s9 = smov (%p1067_p4, %s34_s9), 0  ;;  %p1068_p12 = scmp.ne.s32.totalorder %s1061_s27, 0 }
  0x2e   : > { %s38_s8 = ssub.s32 %s778_s22, %s1082_s9  ;;  %p52_p9 = por %p51_p2, %p50_p1 }
  0x2f   : > { %p41_p8 = scmp.eq.s32.totalorder %s38_s8, 0  ;;  %p920_p13 = por %p1068_p12, %p50_p1 }
  0x30   : > { %s216_s14 = sand.u32 1, %s770_s20   ;;  %s559_s11 = sshll.u32 %s778_s22, 8 }
  0x31   : > { %s928_s15 = scalar_select %p41_p8, %s770_s20, %s43_s10  }
  0x32   : > { %s544_s7 = sshll.u32 %s216_s14, 4  ;;  %s934_s24 = scalar_lea.hbm %s1050_s0, %s559_s11 }
  0x33   : > { %s220_s27 = scalar_lea.vmem [#allocation2], %s544_s7  ;;  %p938_p11 = pnand %p583_p6, %p52_p9 }
  0x34   : > { %s230_s25 = sshll.u32 %s220_s27, 4  ;;  %s217_s10 = scalar_lea.sflag [#allocation3], %s216_s14  ;;  %s936_s25 = int_to_ptr.vmem [resolvable:$true] %s230_s25 }
  0x35   : > { %s666_s12 = scalar_lea.hbm %s934_s24, 256  ;;  %p668_p3 = pneg %p938_p11 }
  0x36   : > { %p667_p0 = scmp.ne.s32.totalorder %s934_s24, %s666_s12  ;;  %s671_s11 = scalar_lea.hbm %s1050_s0, 512 }
  0x37   : > { %p672_p10 = scmp.lt.u32.totalorder %s934_s24, %s1050_s0  ;;  %p673_p4 = scmp.lt.u32.totalorder %s671_s11, %s666_s12 }
  0x38   : > { %p669_p5 = pnand %p668_p3, %p667_p0  ;;  %p675_p2 = scmp.lt.u32.totalorder %s666_s12, %s934_s24 }
  0x39   : > { %p674_p1 = por %p673_p4, %p672_p10 }
  0x3a   : > { %p670_p7 = pneg %p669_p5 }
  0x3b   : > { %p676_p6 = por %p675_p2, %p674_p1 }
  0x3d   : > { %p677_p8 = pnand %p676_p6, %p670_p7 }
  0x3f   : > { %680 = shalt.err (!%p677_p8)
}
  0x40   : > { %s681_s14 = scalar_lea.vmem %s936_s25, 256  ;;  %s785_s27 = smov [#allocation2]  }
  0x41   : > { %p682_p9 = scmp.ne.s32.totalorder %s936_s25, %s681_s14  ;;  %s686_s8 = sshll.u32 %s785_s27, 4  ;;  %s687_s8 = int_to_ptr.vmem [resolvable:$false] %s686_s8 }
  0x42   : > { %s688_s7 = scalar_lea.vmem %s687_s8, 512  ;;  %p689_p5 = scmp.lt.s32.totalorder %s936_s25, %s687_s8 }
  0x43   : > { %p684_p12 = pnand %p682_p9, %p668_p3  ;;  %p690_p10 = scmp.lt.s32.totalorder %s688_s7, %s681_s14 }
  0x45   : > { %p685_p0 = pneg %p684_p12  ;;  %p691_p4 = por %p690_p10, %p689_p5 }
  0x47   : > { %p692_p1 = pnand %p691_p4, %p685_p0 }
  0x49   : > { %695 = shalt.err (!%p692_p1)
}
  0x4a   : > { %577 = dma.hbm_to_vmem [thread:$0]  (!%p938_p11), %s934_s24, 256, %s936_s25, %s217_s10  }
  0x4b   : > { %p1071_p7 = scmp.ne.s32.totalorder %s1064_s30, 0 }
  0x4c   : > { %s970_s12 = sand.u32 (!%p1071_p7), 1, %s766_s19   ;;  %p1072_p3 = scmp.ne.s32.totalorder (!%p1071_p7), %s1062_s28, 0 }
  0x4d   : > { %252 = sbr.rel (%p1071_p7) target bundleno = 325 (0x145), region = 40  ;;  %s548_s11 = sshll.u32 (!%p1071_p7), %s970_s12, 4 }
  0x4e   : > { %s255_s16 = scalar_lea.sflag (!%p1071_p7), [#allocation3], %s970_s12  ;;  %s258_s17 = scalar_lea.vmem (!%p1071_p7), [#allocation2], %s548_s11 }
  0x54   : > { %749 = dma.done.wait (%p1072_p3), %s255_s16, 256  }
  0x55   : > { %751 = vsyncadd (%p1072_p3), %s255_s16, 4294967040  ;;  %p1073_p11 = scmp.ne.s32.totalorder %s1060_s26, 0 }
  0x57   : > { %753 = dma.done.wait (%p1073_p11), [#allocation6], 128  }
  0x58   : > { %755 = vsyncadd (%p1073_p11), [#allocation6], 4294967168  ;;  %v786_v0 = vmov 0.0   ;;  %v787_v1 = vmov 0   ;;  %v312_v2 = vld [vmem:[%s258_s17 + $0x8] sm:$0xff]  ;;  %v311_v3 = vld [vmem:[%s258_s17] sm:$0xff] }
  0x59   : > { %381 = vmatprep.mubr.f32.mxu0 %v786_v0  ;;  %637 = vset.pattern.permute.xlu0 %v787_v1  ;;  %v310_v4 = vld [vmem:[#allocation5] sm:$0xff]  ;;  %vm313_vm0 = vcmask 64512   ;;  %p300_p2 = scmp.lt.s32.totalorder %s774_s21, 1  ;;  %s561_s8 = sshll.u32 %s774_s21, 8 }
  0x5a   : > { %317 = vmatprep.subr.mxu0 %v312_v2  ;;  %v388_v5 = vld [vmem:[%s1052_s2] sm:$0xff]  ;;  %s297_s7 = scalar_lea.vmem [#allocation7], %s548_s11  ;;  %s1001_s28 = scalar_lea.hbm %s1055_s5, %s561_s8 }
  0x5b   : > { %318 = vmatpush1.msra.mxu0 %v311_v3  ;;  %391 = vperm.xlu0 %637, %v388_v5   ;;  %v396_v6 = vld [vmem:[%s1053_s3] sm:$0xff]  ;;  %s301_s25 = scalar_select %p300_p2, %s774_s21, 1 }
  0x5c   : > { %553 = vmatmul.mubr.msk.f32.vlgmr.msra.gmra.mrb[0].mxu0 %vm313_vm0, %v310_v4  ;;  %s427_s16 = sshll.u32 %s297_s7, 4  ;;  %s411_s26 = scalar_lea.sflag [#allocation4], %s970_s12  ;;  %s1003_s16 = int_to_ptr.vmem [resolvable:$true] %s427_s16 }
  0x5d   : > { %s560_s6 = sshll.u32 %s301_s25, 4  ;;  %s696_s21 = scalar_lea.vmem %s1003_s16, 256 }
  0x5e   : > { %s307_s27 = scalar_lea.vmem %s1054_s4, %s560_s6  ;;  %p697_p6 = scmp.ne.s32.totalorder %s1003_s16, %s696_s21 }
  0x5f   : > { %399 = vperm.xlu0 %637, %v396_v6   ;;  %v404_v12 = vld [vmem:[%s307_s27] sm:$0xff]  ;;  %v405_v15 = vld [vmem:[%s307_s27 + $0x8] sm:$0xff]  ;;  %s788_s11 = smov [#allocation7]  }
  0x60   : > { %p698_p8 = pnand %p697_p6, %p920_p13  ;;  %s700_s24 = sshll.u32 %s788_s11, 4  ;;  %s701_s24 = int_to_ptr.vmem [resolvable:$false] %s700_s24 }
  0x61   : > { %s702_s25 = scalar_lea.vmem %s701_s24, 512  ;;  %p703_p12 = scmp.lt.s32.totalorder %s1003_s16, %s701_s24 }
  0x62   : > { %p699_p9 = pneg %p698_p8  ;;  %p704_p0 = scmp.lt.s32.totalorder %s702_s25, %s696_s21 }
  0x64   : > { %p705_p5 = por %p704_p0, %p703_p12 }
  0x66   : > { %p706_p10 = pnand %p705_p5, %p699_p9 }
  0xda   : > { %v392_v7 = vpop.permute.xlu0 %391 }
  0xde   : > { %v400_v11 = vpop.permute.xlu0 %399 }
 0x12f   : > { %v383_v8 = vpop.f32.mrb[0].mxu0 }
 0x130   : > { %v394_v9 = vmul.f32 %v392_v7, %v383_v8  ;;  %v385_v10 = vpop.f32.mrb[1].mxu0 }
 0x131   : > { %v395_v13 = vmul.f32 %v392_v7, %v385_v10 }
 0x132   : > { %v402_v14 = vadd.f32 %v400_v11, %v394_v9 }
 0x133   : > { %v403_v16 = vadd.f32 %v400_v11, %v395_v13 }
 0x134   : > { %v406_v17 = vadd.f32 %v404_v12, %v402_v14 }
 0x135   : > { %v407_v18 = vadd.f32 %v405_v15, %v403_v16 }
 0x136   : > { %408 = vst [vmem:[%s297_s7] sm:$0xff] %v406_v17 }
 0x137   : > { %409 = vst [vmem:[%s297_s7 + $0x8] sm:$0xff] %v407_v18 }
 0x138   : > { %709 = shalt.err (!%p706_p10)
}
 0x139   : > { %s710_s12 = scalar_lea.hbm %s1001_s28, 256  ;;  %s714_s14 = scalar_lea.hbm %s1055_s5, 512 }
 0x13a   : > { %p711_p4 = scmp.ne.s32.totalorder %s1001_s28, %s710_s12  ;;  %p715_p3 = scmp.lt.u32.totalorder %s1001_s28, %s1055_s5 }
 0x13b   : > { %p716_p11 = scmp.lt.u32.totalorder %s714_s14, %s710_s12  ;;  %p718_p6 = scmp.lt.u32.totalorder %s710_s12, %s1001_s28 }
 0x13c   : > { %p712_p1 = pnand %p711_p4, %p920_p13 }
 0x13d   : > { %p717_p2 = por %p716_p11, %p715_p3 }
 0x13e   : > { %p713_p7 = pneg %p712_p1 }
 0x13f   : > { %p719_p8 = por %p718_p6, %p717_p2 }
 0x141   : > { %p720_p9 = pnand %p719_p8, %p713_p7 }
 0x143   : > { %723 = shalt.err (!%p720_p9)
}
 0x144   : > { %568 = dma.vmem_to_hbm [thread:$0]  (%p920_p13), %s1003_s16, 256, %s1001_s28, %s411_s26  }
 0x145 PF: > { %s439_s7 = sand.u32 1, %s762_s18   ;;  %p1074_p12 = scmp.ne.s32.totalorder %s1063_s29, 0 }
 0x146   : > { %p1075_p0 = scmp.ge.s32.totalorder %s782_s23, 2  ;;  %s440_s17 = scalar_lea.sflag [#allocation4], %s439_s7 }
 0x148   : > { %p579_p5 = pnand %p1075_p0, %p1074_p12 }
 0x14a   : > { %757 = dma.done.wait (!%p579_p5), %s440_s17, 256  }
 0x14b   : > { %759 = vsyncadd (!%p579_p5), %s440_s17, 4294967040  ;;  %s22_s23 = sadd.s32 1, %s782_s23   ;;  %s1076_s18 = smov %s766_s19 }
 0x14c   : > { %p19_p10 = scmp.ge.s32.totalorder %s22_s23, 4   ;;  %s1077_s19 = smov %s770_s20 }
 0x14d   : > { %s1078_s20 = smov %s928_s15  ;;  %s1079_s21 = smov %s778_s22 }
 0x14e   : > { %s1080_s22 = smov %s1082_s9  ;;  %21 = sbr.rel (!%p19_p10) target bundleno = 7 (0x7), region = 92 }
 0x155   :  { %445 = vsyncpa [#allocation3], 1 }
 0x156   :  { %447 = vsyncpa [#allocation3 + $0x1], 1 }
 0x157   :  { %448 = vsyncpa [#allocation6], 1 }
 0x158   :  { %449 = vsyncpa [#allocation4], 1 }
 0x159   :  { %451 = vsyncpa [#allocation4 + $0x1], 1 }

</bundles_post_ra>
